<compile_context>
chip_gen: v7x
topology: tpu7x:2x2x1
jax: 0.10.0
libtpu: 0.0.40
codegen_flags: <defaults>
</compile_context>

<pallas_src>
import functools

import jax
import jax.numpy as jnp
from jax.experimental import pallas as pl
from jax.experimental.pallas import tpu as pltpu


def _upsample_conv3x3_kernel(x_ref, halo_ref, cmask_ref, w_ref, b_ref, o_ref,
                             stk_ref, *, tile_h, w2):
    """Fused nearest-2x upsample + 3x3 conv for one (batch, row-tile) step.

    x_ref:     (1, C, NPIX)      column-upsampled input rows of this tile,
                                 flat & lane-dense (NPIX = tile_h * 2W)
    halo_ref:  (1, 1, 2, C, W2)  row above / row below the tile (zeros at the
                                 image border)
    cmask_ref: (2, 1, LPIX)      0/1 column-edge masks for the +-1 col shifts
    w_ref:     (2, 2, C, 3C)     folded weights [row parity dy, row tap a]
    b_ref:     (C, 1)            conv bias (f32)
    o_ref:     (1, C, 2*NPIX)    both output-row parities, row-interleaved
    stk_ref:   (3C, LPIX) VMEM   column-tap stack (kc = 0, 1, 2 along Cin)
    """
    c = x_ref.shape[1]
    npix = tile_h * w2
    lpix = npix + 2 * w2

    # ---- assemble the tile slab (tile rows + one halo row on each side) ----
    # The kc=1 (unshifted) band of the stack doubles as the assembly buffer.
    stk_ref[c:2 * c, 0:w2] = halo_ref[0, 0, 0]             # row above tile
    stk_ref[c:2 * c, w2:w2 + npix] = x_ref[0]              # the tile itself
    stk_ref[c:2 * c, w2 + npix:lpix] = halo_ref[0, 0, 1]   # row below tile
    slab = stk_ref[c:2 * c, :]                             # (C, LPIX)

    # ---- column taps: source columns q-1 / q+1, zeroed at the image edges --
    zcol = jnp.zeros((c, 1), dtype=slab.dtype)
    stk_ref[0:c, 0:1] = zcol
    stk_ref[0:c, 1:lpix] = slab[:, 0:lpix - 1] * cmask_ref[0][:, 1:lpix]
    stk_ref[2 * c:3 * c, lpix - 1:lpix] = zcol
    stk_ref[2 * c:3 * c, 0:lpix - 1] = slab[:, 1:lpix] * cmask_ref[1][:, 0:lpix - 1]

    bias = b_ref[...]                                      # (C, 1) f32

    # ---- row-polyphase: output rows 2r+dy ----------------------------------
    # dy=0 reads source rows {r-1, r}; dy=1 reads {r, r+1}.  Each row tap is a
    # lane window of the (3C, LPIX) stack, so a phase is 2 dots with K = 3C.
    for dy, drs in enumerate(((-1, 0), (0, 1))):
        acc = bias
        for a, dr in enumerate(drs):
            start = (dr + 1) * w2
            acc = acc + jnp.dot(w_ref[dy, a], stk_ref[:, start:start + npix],
                                preferred_element_type=jnp.float32)
        out_dy = acc.astype(o_ref.dtype)                   # (C, NPIX)
        # Interleave output rows in-kernel (no post-hoc HBM transpose):
        # source row r of this parity -> output lanes [(2r + dy) * W2, +W2).
        for r in range(tile_h):
            dst = (2 * r + dy) * w2
            o_ref[0, :, dst:dst + w2] = out_dy[:, r * w2:(r + 1) * w2]


def _pick_tile_h(h, w2, max_pixels=32 * 1024):
    """Largest row tile that divides H, keeps the flat lane dim a multiple of
    128 (unmasked, lane-dense blocks) and bounds per-step VMEM."""
    best = h
    for th in range(1, h + 1):
        if h % th == 0 and (th * w2) % 128 == 0 and th * w2 <= max_pixels:
            best = th
    return best


@functools.partial(jax.jit, static_argnames=("compute_dtype", "tile_h"))
def upsample_forward(x, weight, bias, *, compute_dtype=jnp.bfloat16,
                     tile_h=None):
    """x: (B, C, H, W) -> (B, C, 2H, 2W) NCHW (matches the PyTorch module).

    compute_dtype: matmul-operand dtype (bf16 recommended on TPU; accumulation
    is always f32).  The returned array keeps x.dtype.
    """
    B, C, H, W = x.shape
    w2 = 2 * W
    if tile_h is None:
        tile_h = _pick_tile_h(H, w2)
    if (H % tile_h) or ((tile_h * w2) % 128 and tile_h != H):
        tile_h = H                       # full-height fallback is always legal
    nt = H // tile_h
    npix = tile_h * w2
    lpix = npix + 2 * w2
    cdt = compute_dtype

    # ---- input pre-layout (cheap: input is 4x smaller than the output) -----
    xu = jnp.repeat(x.astype(cdt), 2, axis=3)              # (B, C, H, 2W)
    xu_flat = xu.reshape(B, C, H * w2)                     # lane-dense rows

    # Per-tile halo rows (row above / below each tile; zeros at the border).
    xp = jnp.pad(xu, ((0, 0), (0, 0), (1, 1), (0, 0)))     # (B, C, H+2, 2W)
    top = xp[:, :, 0:H - tile_h + 1:tile_h, :]             # (B, C, nt, 2W)
    bot = xp[:, :, tile_h + 1:H + 2:tile_h, :]             # (B, C, nt, 2W)
    halo = jnp.stack([top, bot], axis=3).transpose(0, 2, 3, 1, 4)  # (B,nt,2,C,2W)

    # Fold the 3x3 kernel into row-polyphase weights.  For output parity dy and
    # row tap a (source row r + {-1,0} or {0,+1}) the 3 kernel rows collapse as
    #   dy=0: [kr0], [kr1+kr2]      dy=1: [kr0+kr1], [kr2]
    # Layout (2, 2, C, 3C), last axis ordered (kc, Cin) to match the stack.
    A = jnp.array([[[1., 0., 0.], [0., 1., 1.]],
                   [[1., 1., 0.], [0., 0., 1.]]], dtype=jnp.float32)
    wf = jnp.einsum('dar,oirc->daoci', A, weight.astype(jnp.float32))
    wf = wf.reshape(2, 2, C, 3 * C).astype(cdt)
    b2 = bias.astype(jnp.float32).reshape(C, 1)

    # Column-edge masks for the +-1 column taps (periodic in the row width).
    pcol = jnp.arange(lpix, dtype=jnp.int32) % w2
    cmask = jnp.stack([(pcol >= 1), (pcol <= w2 - 2)]).astype(cdt)[:, None, :]

    kernel = functools.partial(_upsample_conv3x3_kernel, tile_h=tile_h, w2=w2)
    out_flat = pl.pallas_call(
        kernel,
        out_shape=jax.ShapeDtypeStruct((B, C, 2 * H * w2), x.dtype),
        grid=(B, nt),
        in_specs=[
            pl.BlockSpec((1, C, npix), lambda b, t: (b, 0, t)),
            pl.BlockSpec((1, 1, 2, C, w2), lambda b, t: (b, t, 0, 0, 0)),
            # Grid-constant operands (constant index maps -> DMA'd only once).
            pl.BlockSpec((2, 1, lpix), lambda b, t: (0, 0, 0)),
            pl.BlockSpec((2, 2, C, 3 * C), lambda b, t: (0, 0, 0, 0)),
            pl.BlockSpec((C, 1), lambda b, t: (0, 0)),
        ],
        out_specs=pl.BlockSpec((1, C, 2 * npix), lambda b, t: (b, 0, t)),
        scratch_shapes=[pltpu.VMEM((3 * C, lpix), cdt)],
        compiler_params=pltpu.CompilerParams(
            dimension_semantics=("parallel", "parallel"),
            vmem_limit_bytes=48 * 1024 * 1024,
        ),
    )(xu_flat, halo, cmask, wf, b2)

    # Free (row-major) reshape: flat index (2r+dy)*2W + q  ==  NCHW rows/cols.
    return out_flat.reshape(B, C, 2 * H, 2 * W)


if __name__ == "__main__":
    key = jax.random.PRNGKey(0)
    k_x, k_w, k_b = jax.random.split(key, 3)

    B, C, H, W = 2, 4, 16, 16
    x = jax.random.normal(k_x, (B, C, H, W), dtype=jnp.float32)

    # Parameter shapes / init ranges of nn.Conv2d(C, C, 3, stride=1, padding=1).
    fan_in = C * 3 * 3
    bound = 1.0 / (fan_in ** 0.5)
    weight = jax.random.uniform(k_w, (C, C, 3, 3), jnp.float32, -bound, bound)
    bias = jax.random.uniform(k_b, (C,), jnp.float32, -bound, bound)

    # Pure-JAX reference: nearest-2x upsample + explicit f32 3x3 conv.
    x_up = jnp.repeat(jnp.repeat(x, 2, axis=2), 2, axis=3)
    x_pad = jnp.pad(x_up, ((0, 0), (0, 0), (1, 1), (1, 1)))
    ref = jnp.broadcast_to(bias[None, :, None, None], (B, C, 2 * H, 2 * W))
    for ky in range(3):
        for kx in range(3):
            ref = ref + jnp.einsum(
                'oi,bihw->bohw', weight[:, :, ky, kx],
                x_pad[:, :, ky:ky + 2 * H, kx:kx + 2 * W],
                precision=jax.lax.Precision.HIGHEST)

    # f32-operand run: structural check.  Tolerance is set well above any MXU
    # rounding mode yet far below the magnitude of any indexing/folding bug.
    out_f32 = jax.block_until_ready(
        upsample_forward(x, weight, bias, compute_dtype=jnp.float32, tile_h=8))
    assert out_f32.shape == (B, C, 2 * H, 2 * W)
    assert out_f32.dtype == jnp.float32
    err_f32 = float(jnp.max(jnp.abs(out_f32 - ref)))
    assert err_f32 < 2e-2, f"f32 max abs error vs reference: {err_f32}"

    # bf16-operand run (production path: bf16 MXU operands, f32 accumulation).
    out_bf16 = jax.block_until_ready(
        upsample_forward(x, weight, bias, compute_dtype=jnp.bfloat16, tile_h=8))
    assert out_bf16.shape == (B, C, 2 * H, 2 * W)
    err_bf16 = float(jnp.max(jnp.abs(out_bf16 - ref)))
    assert err_bf16 < 1e-1, f"bf16 max abs error vs reference: {err_bf16}"

    print("KERNEL_OK")
</pallas_src>

<mosaic_0001>
module attributes {stable_mosaic.version = 11 : i64} {
  func.func @_upsample_conv3x3_kernel(%arg0: i32, %arg1: i32, %arg2: memref<1x4x256xf32, #tpu.memory_space<vmem>>, %arg3: memref<1x1x2x4x32xf32, #tpu.memory_space<vmem>>, %arg4: memref<2x1x320xf32, #tpu.memory_space<vmem>>, %arg5: memref<2x2x4x12xf32, #tpu.memory_space<vmem>>, %arg6: memref<4x1xf32, #tpu.memory_space<vmem>>, %arg7: memref<1x4x512xf32, #tpu.memory_space<vmem>>, %arg8: memref<12x320xf32, #tpu.memory_space<vmem>>) attributes {dimension_semantics = [#tpu.dimension_semantics<parallel>, #tpu.dimension_semantics<parallel>], iteration_bounds = array<i64: 2, 2>, scalar_prefetch = 0 : i64, scratch_operands = 1 : i64, tpu.core_type = #tpu.core_type<tc>, window_params = [{transform_indices = @transform_0, window_bounds = array<i64: 1, 4, 256>}, {transform_indices = @transform_1, window_bounds = array<i64: 1, 1, 2, 4, 32>}, {pipeline_mode = #tpu.pipeline_mode<synchronous>, transform_indices = @transform_2, window_bounds = array<i64: 2, 1, 320>}, {pipeline_mode = #tpu.pipeline_mode<synchronous>, transform_indices = @transform_3, window_bounds = array<i64: 2, 2, 4, 12>}, {pipeline_mode = #tpu.pipeline_mode<synchronous>, transform_indices = @transform_4, window_bounds = array<i64: 4, 1>}, {transform_indices = @transform_5, window_bounds = array<i64: 1, 4, 512>}]} {
    %c0 = arith.constant 0 : index
    %c0_0 = arith.constant 0 : index
    %c0_1 = arith.constant 0 : index
    %c0_2 = arith.constant 0 : index
    %c0_3 = arith.constant 0 : index
    %0 = vector.load %arg3[%c0, %c0_0, %c0_1, %c0_2, %c0_3] : memref<1x1x2x4x32xf32, #tpu.memory_space<vmem>>, vector<1x1x1x4x32xf32>
    %1 = vector.shape_cast %0 : vector<1x1x1x4x32xf32> to vector<4x32xf32>
    %c4 = arith.constant 4 : index
    %c0_4 = arith.constant 0 : index
    %2 = vector.load %arg8[%c4, %c0_4] : memref<12x320xf32, #tpu.memory_space<vmem>>, vector<4x32xf32>
    tpu.vector_store %arg8[%c4, %c0_4], %1 {strides = array<i32>} : memref<12x320xf32, #tpu.memory_space<vmem>>, vector<4x32xf32>,
    %c0_5 = arith.constant 0 : index
    %c0_6 = arith.constant 0 : index
    %c0_7 = arith.constant 0 : index
    %3 = vector.load %arg2[%c0_5, %c0_6, %c0_7] : memref<1x4x256xf32, #tpu.memory_space<vmem>>, vector<1x4x256xf32>
    %4 = vector.shape_cast %3 : vector<1x4x256xf32> to vector<4x256xf32>
    %c4_8 = arith.constant 4 : index
    %c32 = arith.constant 32 : index
    %5 = vector.load %arg8[%c4_8, %c32] : memref<12x320xf32, #tpu.memory_space<vmem>>, vector<4x256xf32>
    tpu.vector_store %arg8[%c4_8, %c32], %4 {strides = array<i32>} : memref<12x320xf32, #tpu.memory_space<vmem>>, vector<4x256xf32>,
    %c0_9 = arith.constant 0 : index
    %c0_10 = arith.constant 0 : index
    %c1 = arith.constant 1 : index
    %c0_11 = arith.constant 0 : index
    %c0_12 = arith.constant 0 : index
    %6 = vector.load %arg3[%c0_9, %c0_10, %c1, %c0_11, %c0_12] : memref<1x1x2x4x32xf32, #tpu.memory_space<vmem>>, vector<1x1x1x4x32xf32>
    %7 = vector.shape_cast %6 : vector<1x1x1x4x32xf32> to vector<4x32xf32>
    %c4_13 = arith.constant 4 : index
    %c288 = arith.constant 288 : index
    %8 = vector.load %arg8[%c4_13, %c288] : memref<12x320xf32, #tpu.memory_space<vmem>>, vector<4x32xf32>
    tpu.vector_store %arg8[%c4_13, %c288], %7 {strides = array<i32>} : memref<12x320xf32, #tpu.memory_space<vmem>>, vector<4x32xf32>,
    %c4_14 = arith.constant 4 : index
    %c0_15 = arith.constant 0 : index
    %9 = vector.load %arg8[%c4_14, %c0_15] : memref<12x320xf32, #tpu.memory_space<vmem>>, vector<4x320xf32>
    %cst = arith.constant 0.000000e+00 : f32
    %10 = vector.broadcast %cst : f32 to vector<4x1xf32>
    %c0_16 = arith.constant 0 : index
    %c0_17 = arith.constant 0 : index
    %11 = vector.load %arg8[%c0_16, %c0_17] : memref<12x320xf32, #tpu.memory_space<vmem>>, vector<4x1xf32>
    tpu.vector_store %arg8[%c0_16, %c0_17], %10 {strides = array<i32>} : memref<12x320xf32, #tpu.memory_space<vmem>>, vector<4x1xf32>,
    %12 = vector.extract_strided_slice %9 {offsets = [0, 0], sizes = [4, 319], strides = [1, 1]} : vector<4x320xf32> to vector<4x319xf32>
    %c0_18 = arith.constant 0 : index
    %c0_19 = arith.constant 0 : index
    %c0_20 = arith.constant 0 : index
    %13 = vector.load %arg4[%c0_18, %c0_19, %c0_20] : memref<2x1x320xf32, #tpu.memory_space<vmem>>, vector<1x1x320xf32>
    %14 = vector.shape_cast %13 : vector<1x1x320xf32> to vector<1x320xf32>
    %15 = vector.extract_strided_slice %14 {offsets = [0, 1], sizes = [1, 319], strides = [1, 1]} : vector<1x320xf32> to vector<1x319xf32>
    %16 = vector.broadcast %15 : vector<1x319xf32> to vector<4x319xf32>
    %17 = arith.mulf %12, %16 : vector<4x319xf32>
    %c0_21 = arith.constant 0 : index
    %c1_22 = arith.constant 1 : index
    %18 = vector.load %arg8[%c0_21, %c1_22] : memref<12x320xf32, #tpu.memory_space<vmem>>, vector<4x319xf32>
    tpu.vector_store %arg8[%c0_21, %c1_22], %17 {strides = array<i32>} : memref<12x320xf32, #tpu.memory_space<vmem>>, vector<4x319xf32>,
    %c8 = arith.constant 8 : index
    %c319 = arith.constant 319 : index
    %19 = vector.load %arg8[%c8, %c319] : memref<12x320xf32, #tpu.memory_space<vmem>>, vector<4x1xf32>
    tpu.vector_store %arg8[%c8, %c319], %10 {strides = array<i32>} : memref<12x320xf32, #tpu.memory_space<vmem>>, vector<4x1xf32>,
    %20 = vector.extract_strided_slice %9 {offsets = [0, 1], sizes = [4, 319], strides = [1, 1]} : vector<4x320xf32> to vector<4x319xf32>
    %c1_23 = arith.constant 1 : index
    %c0_24 = arith.constant 0 : index
    %c0_25 = arith.constant 0 : index
    %21 = vector.load %arg4[%c1_23, %c0_24, %c0_25] : memref<2x1x320xf32, #tpu.memory_space<vmem>>, vector<1x1x320xf32>
    %22 = vector.shape_cast %21 : vector<1x1x320xf32> to vector<1x320xf32>
    %23 = vector.extract_strided_slice %22 {offsets = [0, 0], sizes = [1, 319], strides = [1, 1]} : vector<1x320xf32> to vector<1x319xf32>
    %24 = vector.broadcast %23 : vector<1x319xf32> to vector<4x319xf32>
    %25 = arith.mulf %20, %24 : vector<4x319xf32>
    %c8_26 = arith.constant 8 : index
    %c0_27 = arith.constant 0 : index
    %26 = vector.load %arg8[%c8_26, %c0_27] : memref<12x320xf32, #tpu.memory_space<vmem>>, vector<4x319xf32>
    tpu.vector_store %arg8[%c8_26, %c0_27], %25 {strides = array<i32>} : memref<12x320xf32, #tpu.memory_space<vmem>>, vector<4x319xf32>,
    %c0_28 = arith.constant 0 : index
    %c0_29 = arith.constant 0 : index
    %27 = vector.load %arg6[%c0_28, %c0_29] : memref<4x1xf32, #tpu.memory_space<vmem>>, vector<4x1xf32>
    %c0_30 = arith.constant 0 : index
    %c0_31 = arith.constant 0 : index
    %c0_32 = arith.constant 0 : index
    %c0_33 = arith.constant 0 : index
    %28 = vector.load %arg5[%c0_30, %c0_31, %c0_32, %c0_33] : memref<2x2x4x12xf32, #tpu.memory_space<vmem>>, vector<1x1x4x12xf32>
    %29 = vector.shape_cast %28 : vector<1x1x4x12xf32> to vector<4x12xf32>
    %c0_34 = arith.constant 0 : index
    %c0_35 = arith.constant 0 : index
    %30 = vector.load %arg8[%c0_34, %c0_35] : memref<12x320xf32, #tpu.memory_space<vmem>>, vector<12x256xf32>
    %cst_36 = arith.constant dense<0.000000e+00> : vector<4x256xf32>
    %31 = tpu.matmul %29, %30, %cst_36 {dimension_numbers = #tpu.dot_dimension_numbers<[1], [0], [0], [1], [0, 0, 1, 1], [], []>} : vector<4x12xf32>, vector<12x256xf32>, vector<4x256xf32> -> vector<4x256xf32>
    %32 = vector.broadcast %27 : vector<4x1xf32> to vector<4x256xf32>
    %33 = arith.addf %32, %31 : vector<4x256xf32>
    %c0_37 = arith.constant 0 : index
    %c1_38 = arith.constant 1 : index
    %c0_39 = arith.constant 0 : index
    %c0_40 = arith.constant 0 : index
    %34 = vector.load %arg5[%c0_37, %c1_38, %c0_39, %c0_40] : memref<2x2x4x12xf32, #tpu.memory_space<vmem>>, vector<1x1x4x12xf32>
    %35 = vector.shape_cast %34 : vector<1x1x4x12xf32> to vector<4x12xf32>
    %c0_41 = arith.constant 0 : index
    %c32_42 = arith.constant 32 : index
    %36 = vector.load %arg8[%c0_41, %c32_42] : memref<12x320xf32, #tpu.memory_space<vmem>>, vector<12x256xf32>
    %cst_43 = arith.constant dense<0.000000e+00> : vector<4x256xf32>
    %37 = tpu.matmul %35, %36, %cst_43 {dimension_numbers = #tpu.dot_dimension_numbers<[1], [0], [0], [1], [0, 0, 1, 1], [], []>} : vector<4x12xf32>, vector<12x256xf32>, vector<4x256xf32> -> vector<4x256xf32>
    %38 = arith.addf %33, %37 : vector<4x256xf32>
    %39 = vector.extract_strided_slice %38 {offsets = [0, 0], sizes = [4, 32], strides = [1, 1]} : vector<4x256xf32> to vector<4x32xf32>
    %c0_44 = arith.constant 0 : index
    %c0_45 = arith.constant 0 : index
    %c0_46 = arith.constant 0 : index
    %40 = vector.load %arg7[%c0_44, %c0_45, %c0_46] : memref<1x4x512xf32, #tpu.memory_space<vmem>>, vector<1x4x32xf32>
    %41 = vector.shape_cast %40 : vector<1x4x32xf32> to vector<4x32xf32>
    %42 = vector.shape_cast %39 : vector<4x32xf32> to vector<1x4x32xf32>
    tpu.vector_store %arg7[%c0_44, %c0_45, %c0_46], %42 {strides = array<i32>} : memref<1x4x512xf32, #tpu.memory_space<vmem>>, vector<1x4x32xf32>,
    %43 = vector.extract_strided_slice %38 {offsets = [0, 32], sizes = [4, 32], strides = [1, 1]} : vector<4x256xf32> to vector<4x32xf32>
    %c0_47 = arith.constant 0 : index
    %c0_48 = arith.constant 0 : index
    %c64 = arith.constant 64 : index
    %44 = vector.load %arg7[%c0_47, %c0_48, %c64] : memref<1x4x512xf32, #tpu.memory_space<vmem>>, vector<1x4x32xf32>
    %45 = vector.shape_cast %44 : vector<1x4x32xf32> to vector<4x32xf32>
    %46 = vector.shape_cast %43 : vector<4x32xf32> to vector<1x4x32xf32>
    tpu.vector_store %arg7[%c0_47, %c0_48, %c64], %46 {strides = array<i32>} : memref<1x4x512xf32, #tpu.memory_space<vmem>>, vector<1x4x32xf32>,
    %47 = vector.extract_strided_slice %38 {offsets = [0, 64], sizes = [4, 32], strides = [1, 1]} : vector<4x256xf32> to vector<4x32xf32>
    %c0_49 = arith.constant 0 : index
    %c0_50 = arith.constant 0 : index
    %c128 = arith.constant 128 : index
    %48 = vector.load %arg7[%c0_49, %c0_50, %c128] : memref<1x4x512xf32, #tpu.memory_space<vmem>>, vector<1x4x32xf32>
    %49 = vector.shape_cast %48 : vector<1x4x32xf32> to vector<4x32xf32>
    %50 = vector.shape_cast %47 : vector<4x32xf32> to vector<1x4x32xf32>
    tpu.vector_store %arg7[%c0_49, %c0_50, %c128], %50 {strides = array<i32>} : memref<1x4x512xf32, #tpu.memory_space<vmem>>, vector<1x4x32xf32>,
    %51 = vector.extract_strided_slice %38 {offsets = [0, 96], sizes = [4, 32], strides = [1, 1]} : vector<4x256xf32> to vector<4x32xf32>
    %c0_51 = arith.constant 0 : index
    %c0_52 = arith.constant 0 : index
    %c192 = arith.constant 192 : index
    %52 = vector.load %arg7[%c0_51, %c0_52, %c192] : memref<1x4x512xf32, #tpu.memory_space<vmem>>, vector<1x4x32xf32>
    %53 = vector.shape_cast %52 : vector<1x4x32xf32> to vector<4x32xf32>
    %54 = vector.shape_cast %51 : vector<4x32xf32> to vector<1x4x32xf32>
    tpu.vector_store %arg7[%c0_51, %c0_52, %c192], %54 {strides = array<i32>} : memref<1x4x512xf32, #tpu.memory_space<vmem>>, vector<1x4x32xf32>,
    %55 = vector.extract_strided_slice %38 {offsets = [0, 128], sizes = [4, 32], strides = [1, 1]} : vector<4x256xf32> to vector<4x32xf32>
    %c0_53 = arith.constant 0 : index
    %c0_54 = arith.constant 0 : index
    %c256 = arith.constant 256 : index
    %56 = vector.load %arg7[%c0_53, %c0_54, %c256] : memref<1x4x512xf32, #tpu.memory_space<vmem>>, vector<1x4x32xf32>
    %57 = vector.shape_cast %56 : vector<1x4x32xf32> to vector<4x32xf32>
    %58 = vector.shape_cast %55 : vector<4x32xf32> to vector<1x4x32xf32>
    tpu.vector_store %arg7[%c0_53, %c0_54, %c256], %58 {strides = array<i32>} : memref<1x4x512xf32, #tpu.memory_space<vmem>>, vector<1x4x32xf32>,
    %59 = vector.extract_strided_slice %38 {offsets = [0, 160], sizes = [4, 32], strides = [1, 1]} : vector<4x256xf32> to vector<4x32xf32>
    %c0_55 = arith.constant 0 : index
    %c0_56 = arith.constant 0 : index
    %c320 = arith.constant 320 : index
    %60 = vector.load %arg7[%c0_55, %c0_56, %c320] : memref<1x4x512xf32, #tpu.memory_space<vmem>>, vector<1x4x32xf32>
    %61 = vector.shape_cast %60 : vector<1x4x32xf32> to vector<4x32xf32>
    %62 = vector.shape_cast %59 : vector<4x32xf32> to vector<1x4x32xf32>
    tpu.vector_store %arg7[%c0_55, %c0_56, %c320], %62 {strides = array<i32>} : memref<1x4x512xf32, #tpu.memory_space<vmem>>, vector<1x4x32xf32>,
    %63 = vector.extract_strided_slice %38 {offsets = [0, 192], sizes = [4, 32], strides = [1, 1]} : vector<4x256xf32> to vector<4x32xf32>
    %c0_57 = arith.constant 0 : index
    %c0_58 = arith.constant 0 : index
    %c384 = arith.constant 384 : index
    %64 = vector.load %arg7[%c0_57, %c0_58, %c384] : memref<1x4x512xf32, #tpu.memory_space<vmem>>, vector<1x4x32xf32>
    %65 = vector.shape_cast %64 : vector<1x4x32xf32> to vector<4x32xf32>
    %66 = vector.shape_cast %63 : vector<4x32xf32> to vector<1x4x32xf32>
    tpu.vector_store %arg7[%c0_57, %c0_58, %c384], %66 {strides = array<i32>} : memref<1x4x512xf32, #tpu.memory_space<vmem>>, vector<1x4x32xf32>,
    %67 = vector.extract_strided_slice %38 {offsets = [0, 224], sizes = [4, 32], strides = [1, 1]} : vector<4x256xf32> to vector<4x32xf32>
    %c0_59 = arith.constant 0 : index
    %c0_60 = arith.constant 0 : index
    %c448 = arith.constant 448 : index
    %68 = vector.load %arg7[%c0_59, %c0_60, %c448] : memref<1x4x512xf32, #tpu.memory_space<vmem>>, vector<1x4x32xf32>
    %69 = vector.shape_cast %68 : vector<1x4x32xf32> to vector<4x32xf32>
    %70 = vector.shape_cast %67 : vector<4x32xf32> to vector<1x4x32xf32>
    tpu.vector_store %arg7[%c0_59, %c0_60, %c448], %70 {strides = array<i32>} : memref<1x4x512xf32, #tpu.memory_space<vmem>>, vector<1x4x32xf32>,
    %c1_61 = arith.constant 1 : index
    %c0_62 = arith.constant 0 : index
    %c0_63 = arith.constant 0 : index
    %c0_64 = arith.constant 0 : index
    %71 = vector.load %arg5[%c1_61, %c0_62, %c0_63, %c0_64] : memref<2x2x4x12xf32, #tpu.memory_space<vmem>>, vector<1x1x4x12xf32>
    %72 = vector.shape_cast %71 : vector<1x1x4x12xf32> to vector<4x12xf32>
    %c0_65 = arith.constant 0 : index
    %c32_66 = arith.constant 32 : index
    %73 = vector.load %arg8[%c0_65, %c32_66] : memref<12x320xf32, #tpu.memory_space<vmem>>, vector<12x256xf32>
    %cst_67 = arith.constant dense<0.000000e+00> : vector<4x256xf32>
    %74 = tpu.matmul %72, %73, %cst_67 {dimension_numbers = #tpu.dot_dimension_numbers<[1], [0], [0], [1], [0, 0, 1, 1], [], []>} : vector<4x12xf32>, vector<12x256xf32>, vector<4x256xf32> -> vector<4x256xf32>
    %75 = vector.broadcast %27 : vector<4x1xf32> to vector<4x256xf32>
    %76 = arith.addf %75, %74 : vector<4x256xf32>
    %c1_68 = arith.constant 1 : index
    %c1_69 = arith.constant 1 : index
    %c0_70 = arith.constant 0 : index
    %c0_71 = arith.constant 0 : index
    %77 = vector.load %arg5[%c1_68, %c1_69, %c0_70, %c0_71] : memref<2x2x4x12xf32, #tpu.memory_space<vmem>>, vector<1x1x4x12xf32>
    %78 = vector.shape_cast %77 : vector<1x1x4x12xf32> to vector<4x12xf32>
    %c0_72 = arith.constant 0 : index
    %c64_73 = arith.constant 64 : index
    %79 = vector.load %arg8[%c0_72, %c64_73] : memref<12x320xf32, #tpu.memory_space<vmem>>, vector<12x256xf32>
    %cst_74 = arith.constant dense<0.000000e+00> : vector<4x256xf32>
    %80 = tpu.matmul %78, %79, %cst_74 {dimension_numbers = #tpu.dot_dimension_numbers<[1], [0], [0], [1], [0, 0, 1, 1], [], []>} : vector<4x12xf32>, vector<12x256xf32>, vector<4x256xf32> -> vector<4x256xf32>
    %81 = arith.addf %76, %80 : vector<4x256xf32>
    %82 = vector.extract_strided_slice %81 {offsets = [0, 0], sizes = [4, 32], strides = [1, 1]} : vector<4x256xf32> to vector<4x32xf32>
    %c0_75 = arith.constant 0 : index
    %c0_76 = arith.constant 0 : index
    %c32_77 = arith.constant 32 : index
    %83 = vector.load %arg7[%c0_75, %c0_76, %c32_77] : memref<1x4x512xf32, #tpu.memory_space<vmem>>, vector<1x4x32xf32>
    %84 = vector.shape_cast %83 : vector<1x4x32xf32> to vector<4x32xf32>
    %85 = vector.shape_cast %82 : vector<4x32xf32> to vector<1x4x32xf32>
    tpu.vector_store %arg7[%c0_75, %c0_76, %c32_77], %85 {strides = array<i32>} : memref<1x4x512xf32, #tpu.memory_space<vmem>>, vector<1x4x32xf32>,
    %86 = vector.extract_strided_slice %81 {offsets = [0, 32], sizes = [4, 32], strides = [1, 1]} : vector<4x256xf32> to vector<4x32xf32>
    %c0_78 = arith.constant 0 : index
    %c0_79 = arith.constant 0 : index
    %c96 = arith.constant 96 : index
    %87 = vector.load %arg7[%c0_78, %c0_79, %c96] : memref<1x4x512xf32, #tpu.memory_space<vmem>>, vector<1x4x32xf32>
    %88 = vector.shape_cast %87 : vector<1x4x32xf32> to vector<4x32xf32>
    %89 = vector.shape_cast %86 : vector<4x32xf32> to vector<1x4x32xf32>
    tpu.vector_store %arg7[%c0_78, %c0_79, %c96], %89 {strides = array<i32>} : memref<1x4x512xf32, #tpu.memory_space<vmem>>, vector<1x4x32xf32>,
    %90 = vector.extract_strided_slice %81 {offsets = [0, 64], sizes = [4, 32], strides = [1, 1]} : vector<4x256xf32> to vector<4x32xf32>
    %c0_80 = arith.constant 0 : index
    %c0_81 = arith.constant 0 : index
    %c160 = arith.constant 160 : index
    %91 = vector.load %arg7[%c0_80, %c0_81, %c160] : memref<1x4x512xf32, #tpu.memory_space<vmem>>, vector<1x4x32xf32>
    %92 = vector.shape_cast %91 : vector<1x4x32xf32> to vector<4x32xf32>
    %93 = vector.shape_cast %90 : vector<4x32xf32> to vector<1x4x32xf32>
    tpu.vector_store %arg7[%c0_80, %c0_81, %c160], %93 {strides = array<i32>} : memref<1x4x512xf32, #tpu.memory_space<vmem>>, vector<1x4x32xf32>,
    %94 = vector.extract_strided_slice %81 {offsets = [0, 96], sizes = [4, 32], strides = [1, 1]} : vector<4x256xf32> to vector<4x32xf32>
    %c0_82 = arith.constant 0 : index
    %c0_83 = arith.constant 0 : index
    %c224 = arith.constant 224 : index
    %95 = vector.load %arg7[%c0_82, %c0_83, %c224] : memref<1x4x512xf32, #tpu.memory_space<vmem>>, vector<1x4x32xf32>
    %96 = vector.shape_cast %95 : vector<1x4x32xf32> to vector<4x32xf32>
    %97 = vector.shape_cast %94 : vector<4x32xf32> to vector<1x4x32xf32>
    tpu.vector_store %arg7[%c0_82, %c0_83, %c224], %97 {strides = array<i32>} : memref<1x4x512xf32, #tpu.memory_space<vmem>>, vector<1x4x32xf32>,
    %98 = vector.extract_strided_slice %81 {offsets = [0, 128], sizes = [4, 32], strides = [1, 1]} : vector<4x256xf32> to vector<4x32xf32>
    %c0_84 = arith.constant 0 : index
    %c0_85 = arith.constant 0 : index
    %c288_86 = arith.constant 288 : index
    %99 = vector.load %arg7[%c0_84, %c0_85, %c288_86] : memref<1x4x512xf32, #tpu.memory_space<vmem>>, vector<1x4x32xf32>
    %100 = vector.shape_cast %99 : vector<1x4x32xf32> to vector<4x32xf32>
    %101 = vector.shape_cast %98 : vector<4x32xf32> to vector<1x4x32xf32>
    tpu.vector_store %arg7[%c0_84, %c0_85, %c288_86], %101 {strides = array<i32>} : memref<1x4x512xf32, #tpu.memory_space<vmem>>, vector<1x4x32xf32>,
    %102 = vector.extract_strided_slice %81 {offsets = [0, 160], sizes = [4, 32], strides = [1, 1]} : vector<4x256xf32> to vector<4x32xf32>
    %c0_87 = arith.constant 0 : index
    %c0_88 = arith.constant 0 : index
    %c352 = arith.constant 352 : index
    %103 = vector.load %arg7[%c0_87, %c0_88, %c352] : memref<1x4x512xf32, #tpu.memory_space<vmem>>, vector<1x4x32xf32>
    %104 = vector.shape_cast %103 : vector<1x4x32xf32> to vector<4x32xf32>
    %105 = vector.shape_cast %102 : vector<4x32xf32> to vector<1x4x32xf32>
    tpu.vector_store %arg7[%c0_87, %c0_88, %c352], %105 {strides = array<i32>} : memref<1x4x512xf32, #tpu.memory_space<vmem>>, vector<1x4x32xf32>,
    %106 = vector.extract_strided_slice %81 {offsets = [0, 192], sizes = [4, 32], strides = [1, 1]} : vector<4x256xf32> to vector<4x32xf32>
    %c0_89 = arith.constant 0 : index
    %c0_90 = arith.constant 0 : index
    %c416 = arith.constant 416 : index
    %107 = vector.load %arg7[%c0_89, %c0_90, %c416] : memref<1x4x512xf32, #tpu.memory_space<vmem>>, vector<1x4x32xf32>
    %108 = vector.shape_cast %107 : vector<1x4x32xf32> to vector<4x32xf32>
    %109 = vector.shape_cast %106 : vector<4x32xf32> to vector<1x4x32xf32>
    tpu.vector_store %arg7[%c0_89, %c0_90, %c416], %109 {strides = array<i32>} : memref<1x4x512xf32, #tpu.memory_space<vmem>>, vector<1x4x32xf32>,
    %110 = vector.extract_strided_slice %81 {offsets = [0, 224], sizes = [4, 32], strides = [1, 1]} : vector<4x256xf32> to vector<4x32xf32>
    %c0_91 = arith.constant 0 : index
    %c0_92 = arith.constant 0 : index
    %c480 = arith.constant 480 : index
    %111 = vector.load %arg7[%c0_91, %c0_92, %c480] : memref<1x4x512xf32, #tpu.memory_space<vmem>>, vector<1x4x32xf32>
    %112 = vector.shape_cast %111 : vector<1x4x32xf32> to vector<4x32xf32>
    %113 = vector.shape_cast %110 : vector<4x32xf32> to vector<1x4x32xf32>
    tpu.vector_store %arg7[%c0_91, %c0_92, %c480], %113 {strides = array<i32>} : memref<1x4x512xf32, #tpu.memory_space<vmem>>, vector<1x4x32xf32>,
    return
  }
  func.func @transform_0(%arg0: i32, %arg1: i32) -> (i32, i32, i32) {
    %c0_i32 = arith.constant 0 : i32
    %c0_i32_0 = arith.constant 0 : i32
    return %arg0, %c0_i32, %arg1 : i32, i32, i32
  }
  func.func @transform_1(%arg0: i32, %arg1: i32) -> (i32, i32, i32, i32, i32) {
    %c0_i32 = arith.constant 0 : i32
    %c0_i32_0 = arith.constant 0 : i32
    %c0_i32_1 = arith.constant 0 : i32
    %c0_i32_2 = arith.constant 0 : i32
    return %arg0, %arg1, %c0_i32, %c0_i32_0, %c0_i32_1 : i32, i32, i32, i32, i32
  }
  func.func @transform_2(%arg0: i32, %arg1: i32) -> (i32, i32, i32) {
    %c0_i32 = arith.constant 0 : i32
    %c0_i32_0 = arith.constant 0 : i32
    %c0_i32_1 = arith.constant 0 : i32
    %c0_i32_2 = arith.constant 0 : i32
    return %c0_i32, %c0_i32_0, %c0_i32_1 : i32, i32, i32
  }
  func.func @transform_3(%arg0: i32, %arg1: i32) -> (i32, i32, i32, i32) {
    %c0_i32 = arith.constant 0 : i32
    %c0_i32_0 = arith.constant 0 : i32
    %c0_i32_1 = arith.constant 0 : i32
    %c0_i32_2 = arith.constant 0 : i32
    %c0_i32_3 = arith.constant 0 : i32
    return %c0_i32, %c0_i32_0, %c0_i32_1, %c0_i32_2 : i32, i32, i32, i32
  }
  func.func @transform_4(%arg0: i32, %arg1: i32) -> (i32, i32) {
    %c0_i32 = arith.constant 0 : i32
    %c0_i32_0 = arith.constant 0 : i32
    %c0_i32_1 = arith.constant 0 : i32
    return %c0_i32, %c0_i32_0 : i32, i32
  }
  func.func @transform_5(%arg0: i32, %arg1: i32) -> (i32, i32, i32) {
    %c0_i32 = arith.constant 0 : i32
    %c0_i32_0 = arith.constant 0 : i32
    return %arg0, %c0_i32, %arg1 : i32, i32, i32
  }
}

</mosaic_0001>

<bundles_post_ra>
// kernel: upsample_forward.1
= control target key start
LH: loop header
LB: loop body
LE: loop exit
PB: predicated region body
PF: predicated region fallthrough
CT: control target
= control target key end

     0   :  { %s1268_s18 = smov 0   ;;  %s1270_s19 = smov 0   ;;  %s1467_s0 = inlined_call_operand.vmem [shape: f32[2,4,512], index: 0, kind: input, shape index: {}]   ;;  %s1468_s1 = inlined_call_operand.vmem [shape: f32[2,2,2,4,32], index: 1, kind: input, shape index: {}]   ;;  %s1469_s2 = inlined_call_operand.vmem [shape: f32[2,1,320], index: 2, kind: input, shape index: {}]   ;;  %s1470_s3 = inlined_call_operand.vmem [shape: f32[2,2,4,12], index: 3, kind: input, shape index: {}]   ;;  %s1471_s4 = inlined_call_operand.vmem [shape: f32[4,1], index: 4, kind: input, shape index: {}]   ;;  %s1472_s5 = inlined_call_operand.vmem [shape: f32[2,4,1024], index: 5, kind: output, shape index: {}]  }
   0x1   :  { %s1272_s20 = smov 0   ;;  %s1274_s21 = smov 0  }
   0x2   :  { %s1276_s22 = smov 0  }
   0x3 LB: > { %s24_s23 = sadd.s32 1, %s1220_s20  ;;  %s27_s24 = sadd.s32 1, %s1224_s21  ;;  %s1228_s22 = sphi %s1276_s22, %s15_s22   ;;  %s1224_s21 = sphi %s1274_s21, %s1478_s21   ;;  %s1220_s20 = sphi %s1272_s20, %s1477_s20   ;;  %s1216_s19 = sphi %s1270_s19, %s1476_s19   ;;  %s1212_s18 = sphi %s1268_s18, %s1475_s18  }
   0x4   : > { %p25_p0 = scmp.ge.s32.totalorder %s24_s23, 2  ;;  %p1034_p1 = scmp.ge.s32.totalorder %s1228_s22, 1 }
   0x5   : > { %p224_p2 = scmp.lt.s32.totalorder %s1228_s22, 5 }
   0x6   : > { %s1480_s23 = smov (%p25_p0, %s24_s23), 0  ;;  %s1482_s24 = smov (!%p25_p0, %s27_s24), %s1224_s21 }
   0x7   : > { %p225_p3 = pnand %p1034_p1, %p224_p2  ;;  %p29_p4 = scmp.ge.s32.totalorder %s1482_s24, 2 }
   0x8   : > { %v336_v0 = vlaneseq (!%p225_p3)  ;;  %p270_p5 = scmp.lt.s32.totalorder (!%p225_p3), %s1216_s19, 1  ;;  %p281_p6 = scmp.lt.s32.totalorder (!%p225_p3), %s1212_s18, 1  ;;  %v334_v2 = vld [vmem:[%s1469_s2] sm:$0x7] (!%p225_p3)  ;;  %vm302_vm0 = vcmask (!%p225_p3), 261124   ;;  %vm332_vm1 = vcmask (!%p225_p3), 3072  }
   0x9   : > { %s1484_s24 = smov (%p29_p4, %s1482_s24), 0  ;;  %228 = sbr.rel (%p225_p3) target bundleno = 773 (0x305), region = 40 }
   0xa   : > { %v337_v1 = vshrl.u32 (!%p225_p3), %v336_v0, 7  ;;  %s1035_s7 = sshll.u32 (!%p225_p3), %s1212_s18, 1  ;;  %s1230_s8 = smov (!%p225_p3), 127   ;;  %v1045_v13 = vld [vmem:[%s1469_s2 + $0x3] sm:$0x7] (!%p225_p3)  ;;  %v1233_v19 = vmov (!%p225_p3), 0.0  }
   0xb   : > { %p272_p7 = scmp.lt.s32.totalorder (!%p225_p3), %s1035_s7, 3  ;;  %s1231_s12 = smov (!%p225_p3), 32   ;;  %333 = vst.msk [vmem:[#allocation2] sm:$0xf] (!%p225_p3), %vm332_vm1, %v1233_v19  ;;  %519 = vmatprep.mubr.f32.mxu0 (!%p225_p3), %v1233_v19  ;;  %779 = vmatprep.mubr.f32.mxu1 (!%p225_p3), %v1233_v19  ;;  %vm327_vm2 = vcmask (!%p225_p3), 523524   ;;  %vm311_vm3 = vcmask (!%p225_p3), 261120  }
   0xc   : > { %v342_v3 = vsub.s32 (!%p225_p3), 1, %v337_v1  ;;  %v338_v4 = vsub.s32 (!%p225_p3), 0, %v337_v1  ;;  %v346_v7 = vsub.s32 (!%p225_p3), 2, %v337_v1  ;;  %vm316_vm4 = vcmask (!%p225_p3), 1047812   ;;  %s1041_s16 = sshll.u32 (!%p225_p3), %s1212_s18, 2 }
   0xd   : > { %vm354_vm5 = vcmask (!%p225_p3), 1039360   ;;  %vm386_vm6 = vcmask (!%p225_p3), 519672   ;;  %vm375_vm7 = vcmask (!%p225_p3), 7168   ;;  %vm381_vm8 = vcmask (!%p225_p3), 1043464   ;;  %p291_p8 = scmp.lt.s32.totalorder (!%p225_p3), %s1041_s16, 7 }
   0xe   : > { %v343_v5 = vrot.slane (!%p225_p3), %v334_v2, %v342_v3  ;;  %v339_v6 = vrot.slane (!%p225_p3), %v334_v2, %v338_v4  ;;  %v347_v12 = vrot.slane (!%p225_p3), %v334_v2, %v346_v7  ;;  %v398_v16 = vrot.slane (!%p225_p3), %v1045_v13, %v342_v3  ;;  %387 = vst.msk [vmem:[#allocation2 + $0x28] sm:$0xf] (!%p225_p3), %vm386_vm6, %v1233_v19 }
   0xf   : > { %v394_v17 = vrot.slane (!%p225_p3), %v1045_v13, %v338_v4  ;;  %v402_v18 = vrot.slane (!%p225_p3), %v1045_v13, %v346_v7  ;;  %vm384_vm9 = vcmask (!%p225_p3), 519168   ;;  %vm436_vm10 = vcmask (!%p225_p3), 510976  }
  0x10   : > { %s1486_s19 = smov (!%p270_p5, %s1216_s19), 1  ;;  %350 = vrot.lane.b32.xlu0 %v343_v5, %s1230_s8  ;;  %348 = vrot.lane.b32.xlu1 %v339_v6, %s1230_s8  ;;  %s1488_s7 = smov (!%p272_p7, %s1035_s7), 3  ;;  %vm448_vm11 = vcmask 1043456   ;;  %vm1235_vm12 = vmmov 1   ;;  %vm444_vm14 = vcmask 97280   ;;  %vm559_vm15 = vcmask 785408  }
  0x11   : > { %s282_s27 = scalar_select %p281_p6, %s1212_s18, 1  ;;  %vm1348_vm13 = vmpackc.low %vm448_vm11, %vm1235_vm12  ;;  %vm646_vm1 = vcmask 257024  }
  0x12   : > { %s1036_s28 = sshll.u32 %s1486_s19, 2  ;;  %s1490_s16 = smov (!%p291_p8, %s1041_s16), 7 }
  0x13   : > { %s1038_s29 = sshll.u32 %s282_s27, 1  ;;  %s275_s13 = sadd.s32 %s1036_s28, %s1488_s7 }
  0x14   : > { %s285_s30 = sadd.s32 %s1038_s29, %s1036_s28  ;;  %s1037_s14 = sshll.u32 %s275_s13, 2 }
  0x15   : > { %s1040_s6 = sshll.u32 %s285_s30, 2  ;;  %s277_s26 = scalar_lea.vmem %s1467_s0, %s1037_s14 }
  0x16   : > { %s287_s11 = scalar_lea.vmem %s1468_s1, %s1040_s6  ;;  %v304_v14 = vld [vmem:[%s277_s26] sm:$0xff]  ;;  %s1232_s27 = smov 1  }
  0x17   : > { %v1044_v8 = vld [vmem:[%s287_s11 + $0x4] sm:$0xf]  ;;  %v298_v9 = vld [vmem:[%s287_s11] sm:$0xf]  ;;  %309 = vrot.lane.b32.xlu0 %v304_v14, %s1231_s12  ;;  %v306_v15 = vcombine.low %v304_v14, %v304_v14  ;;  %s1234_s28 = smov 96   ;;  %s1236_s6 = smov 64  }
  0x18   : > { %v323_v10 = vrot.slane %v1044_v8, 4  ;;  %v300_v11 = vrot.slane %v298_v9, 4  ;;  %s1042_s17 = sshll.u32 %s1486_s19, 3 }
  0x19   : > { %s294_s25 = sadd.s32 %s1042_s17, %s1490_s16 }
  0x1a   : > { %324 = vrot.lane.b32.xlu1 %v323_v10, %s1231_s12  ;;  %303 = vst.msk [vmem:[#allocation2] sm:$0xf0] %vm302_vm0, %v300_v11  ;;  %v439_v11 = vld [vmem:[%s1470_s3] sm:$0xf]  ;;  %s1043_s26 = sshll.u32 %s294_s25, 2 }
  0x1b   : > { %307 = vrot.lane.b32.xlu0 %v306_v15, %s1231_s12  ;;  %v1237_v15 = vmov 0   ;;  %s1410_s30 = scalar_lea.vmem %s1472_s5, %s1043_s26 }
  0x1c   : > { %1188 = vset.pattern.permute.xlu0 %v1237_v15 }
  0x1e   : > { %352 = vrot.lane.b32.xlu1 %v347_v12, %s1230_s8 }
  0x1f   : > { %403 = vrot.lane.b32.xlu0 %v394_v17, %s1232_s27 }
  0x22   : > { %405 = vrot.lane.b32.xlu1 %v398_v16, %s1232_s27  ;;  %v438_v16 = vld [vmem:[%s1471_s4] sm:$0xf] }
  0x23   : > { %407 = vrot.lane.b32.xlu0 %v402_v18, %s1232_s27 }
  0x82   : > { %v351_v20 = vpop.permute.xlu0 %350  ;;  %v349_v21 = vpop.permute.xlu1 %348 }
  0x83   : > { %v355_v29 = vsel %vm354_vm5, %v349_v21, %v351_v20 }
  0x89   : > { %v310_v23 = vpop.permute.xlu0 %309 }
  0x8a   : > { %319 = vst.msk [vmem:[#allocation2 + $0x10] sm:$0xf0] %vm302_vm0, %v310_v23  ;;  %vm802_vm0 = vcmask 523264  }
  0x8c   : > { %v325_v22 = vpop.permute.xlu1 %324 }
  0x8d   : > { %328 = vst.msk [vmem:[#allocation2 + $0x10] sm:$0xf0] %vm327_vm2, %v325_v22  ;;  %v308_v24 = vpop.permute.xlu0 %307  ;;  %vm652_vm2 = vcmask 781824  }
  0x8e   : > { %v312_v25 = vsel %vm311_vm3, %v308_v24, %v310_v23  ;;  %317 = vst.msk [vmem:[#allocation2] sm:$0xf0] %vm316_vm4, %v308_v24  ;;  %vm893_vm3 = vcmask 519424   ;;  %vm898_vm4 = vcmask 1044224  }
  0x8f   : > { %318 = vst [vmem:[#allocation2 + $0x8] sm:$0xf0] %v312_v25 }
  0x90   : > { %v353_v26 = vpop.permute.xlu1 %352 }
  0x91   : > { %v404_v27 = vpop.permute.xlu0 %403  ;;  %v356_v32 = vsel %vm354_vm5, %v351_v20, %v353_v26 }
  0x94   : > { %v406_v28 = vpop.permute.xlu1 %405  ;;  %v331_v30 = vld [vmem:[#allocation2 + $0x10] sm:$0xf0] }
  0x95   : > { %v329_v31 = vld [vmem:[#allocation2] sm:$0xf0]  ;;  %v409_v35 = vsel %vm375_vm7, %v404_v27, %v406_v28  ;;  %v408_v36 = vpop.permute.xlu0 %407  ;;  %v362_v38 = vmul.f32 %v353_v26, %v331_v30 }
  0x96   : > { %v360_v33 = vmul.f32 %v355_v29, %v329_v31  ;;  %v330_v34 = vld [vmem:[#allocation2 + $0x8] sm:$0xf0]  ;;  %v410_v41 = vsel %vm375_vm7, %v406_v28, %v408_v36  ;;  %v414_v45 = vmul.f32 %v404_v27, %v329_v31 }
  0x97   : > { %v361_v37 = vmul.f32 %v356_v32, %v330_v34  ;;  %v415_v40 = vmul.f32 %v409_v35, %v330_v34  ;;  %v368_v43 = vrot.slane %v362_v38, 4  ;;  %v416_v44 = vmul.f32 %v410_v41, %v331_v30 }
  0x98   : > { %v366_v39 = vrot.slane %v360_v33, 4  ;;  %v420_v48 = vrot.slane %v414_v45, 4 }
  0x99   : > { %v367_v42 = vrot.slane %v361_v37, 4  ;;  %v421_v46 = vrot.slane %v415_v40, 4  ;;  %v422_v47 = vrot.slane %v416_v44, 4  ;;  %v1053_v40 = vld [vmem:[%s1470_s3 + $0x8] sm:$0xf] }
  0x9a   : > { %369 = vrot.lane.b32.xlu1 %v366_v39, %s1232_s27 }
  0x9b   : > { %371 = vrot.lane.b32.xlu0 %v367_v42, %s1232_s27 }
  0x9e   : > { %373 = vrot.lane.b32.xlu1 %v368_v43, %s1232_s27 }
  0x9f   : > { %425 = vrot.lane.b32.xlu0 %v421_v46, %s1230_s8 }
  0xa2   : > { %427 = vrot.lane.b32.xlu1 %v422_v47, %s1230_s8 }
  0xa3   : > { %423 = vrot.lane.b32.xlu0 %v420_v48, %s1230_s8 }
 0x10c   : > { %v370_v49 = vpop.permute.xlu1 %369 }
 0x10d   : > { %382 = vst.msk [vmem:[#allocation2] sm:$0xf] %vm381_vm8, %v370_v49  ;;  %v372_v50 = vpop.permute.xlu0 %371 }
 0x10e   : > { %v376_v51 = vsel %vm375_vm7, %v370_v49, %v372_v50 }
 0x10f   : > { %383 = vst [vmem:[#allocation2 + $0x8] sm:$0xf] %v376_v51 }
 0x110   : > { %v374_v52 = vpop.permute.xlu1 %373 }
 0x111   : > { %v377_v53 = vsel %vm375_vm7, %v372_v50, %v374_v52  ;;  %v426_v54 = vpop.permute.xlu0 %425 }
 0x112   : > { %385 = vst.msk [vmem:[#allocation2 + $0x10] sm:$0xf] %vm384_vm9, %v377_v53 }
 0x114   : > { %v428_v55 = vpop.permute.xlu1 %427  ;;  %v678_v4 = vld [vmem:[#allocation2] sm:$0xff] }
 0x115   : > { %v430_v56 = vsel %vm354_vm5, %v426_v54, %v428_v55  ;;  %437 = vst.msk [vmem:[#allocation2 + $0x28] sm:$0xf] %vm436_vm10, %v428_v55  ;;  %v424_v57 = vpop.permute.xlu0 %423 }
 0x116   : > { %435 = vst [vmem:[#allocation2 + $0x20] sm:$0xf] %v430_v56  ;;  %v429_v58 = vsel %vm354_vm5, %v424_v57, %v426_v54  ;;  %v679_v59 = vld [vmem:[#allocation2 + $0x8] sm:$0xff] }
 0x117   : > { %434 = vst [vmem:[#allocation2 + $0x18] sm:$0xf] %v429_v58  ;;  %v1049_v58 = vld [vmem:[%s1470_s3 + $0x4] sm:$0xf] }
 0x119   : > { %v680_v60 = vld [vmem:[#allocation2 + $0x10] sm:$0xff] }
 0x11a   : > { %v1143_v61 = vpack.i.bf16 %v680_v60, %v679_v59 }
 0x11c   : > { %1144 = vrot.lane.b32.xlu1 %v1143_v61, %s1234_s28  ;;  %v683_v62 = vld [vmem:[#allocation2 + $0x28] sm:$0xf] }
 0x11d   : > { %v682_v63 = vld [vmem:[#allocation2 + $0x20] sm:$0xf]  ;;  %v540_v10 = vld [vmem:[#allocation2 + $0x28] sm:$0xf] }
 0x11e   : > { %v443_v0 = vld [vmem:[#allocation2 + $0x20] sm:$0xf]  ;;  %v1148_v2 = vpack.i.bf16 %v683_v62, %v682_v63  ;;  %v681_v5 = vld [vmem:[#allocation2 + $0x18] sm:$0xf] }
 0x11f   : > { %v1063_v3 = vpack.c.bf16 %v443_v0, %v679_v59  ;;  %v442_v6 = vld [vmem:[#allocation2 + $0x18] sm:$0xf]  ;;  %v1153_v7 = vpack.i.bf16 %v681_v5, %v678_v4  ;;  %v539_v9 = vld [vmem:[#allocation2 + $0x20] sm:$0xf]  ;;  %v1057_v0 = vld [vmem:[%s1470_s3 + $0xc] sm:$0xf] }
 0x120   : > { %v1066_v8 = vpack.c.bf16 %v442_v6, %v678_v4  ;;  %1149 = vrot.lane.b32.xlu0 %v1148_v2, %s1234_s28  ;;  %v1163_v12 = vpack.i.bf16 %v540_v10, %v539_v9  ;;  %v538_v13 = vld [vmem:[#allocation2 + $0x18] sm:$0xf] }
 0x121   : > { %1065 = vmatprep.subr.msk.bf16.mxu0 %vm1348_vm13, %v1063_v3  ;;  %1154 = vrot.lane.b32.xlu1 %v1153_v7, %s1234_s28  ;;  %v1168_v14 = vpack.i.bf16 %v538_v13, %v678_v4 }
 0x122   : > { %1068 = vmatpush1.bf16.msk.msra.mxu0 %vm1348_vm13, %v1066_v8 }
 0x124   : > { %1159 = vrot.lane.b32.xlu0 %v1143_v61, %s1234_s28 }
 0x125   : > { %1048 = vmatmul.mubr.msk.f32.vlgmr.msra.gmra.mrb[0].mxu0 %vm444_vm14, %v439_v11  ;;  %1164 = vrot.lane.b32.xlu1 %v1163_v12, %s1234_s28 }
 0x126   : > { %637 = vmatprep.mubr.f32.mxu0 %v1233_v19 }
 0x128   : > { %1169 = vrot.lane.b32.xlu0 %v1168_v14, %s1234_s28 }
 0x129   : > { %1174 = vrot.lane.b32.xlu1 %v1143_v61, %s1236_s6 }
 0x12c   : > { %1179 = vrot.lane.b32.xlu0 %v1148_v2, %s1236_s6 }
 0x12d   : > { %1184 = vrot.lane.b32.xlu1 %v1153_v7, %s1236_s6 }
 0x130   : > { %528 = vperm.xlu0 %1188, %v438_v16  }
 0x18e   : > { %v1145_v17 = vpop.permute.xlu1 %1144 }
 0x18f   : > { %v1147_v18 = vunpack.i.h.bf16 %v1145_v17  ;;  %v1146_v20 = vunpack.i.l.bf16 %v1145_v17 }
 0x191   : > { %v703_v27 = vsel %vm559_vm15, %v1146_v20, %v1147_v18 }
 0x192   : > { %v1150_v21 = vpop.permute.xlu0 %1149 }
 0x193   : > { %v1152_v22 = vunpack.i.h.bf16 %v1150_v21  ;;  %v1151_v23 = vunpack.i.l.bf16 %v1150_v21  ;;  %v1155_v24 = vpop.permute.xlu1 %1154 }
 0x194   : > { %v1157_v25 = vunpack.i.h.bf16 %v1155_v24  ;;  %v1156_v26 = vunpack.i.l.bf16 %v1155_v24 }
 0x195   : > { %v705_v28 = vsel %vm559_vm15, %v1151_v23, %v1152_v22 }
 0x196   : > { %v1160_v29 = vpop.permute.xlu0 %1159  ;;  %v1075_v30 = vpack.c.bf16 %v705_v28, %v703_v27  ;;  %v702_v31 = vsel %vm559_vm15, %v1156_v26, %v1146_v20  ;;  %v704_v32 = vsel %vm559_vm15, %v1157_v25, %v1151_v23 }
 0x197   : > { %v1162_v33 = vunpack.i.h.bf16 %v1160_v29  ;;  %v1161_v34 = vunpack.i.l.bf16 %v1160_v29  ;;  %v1165_v35 = vpop.permute.xlu1 %1164  ;;  %v1078_v36 = vpack.c.bf16 %v704_v32, %v702_v31 }
 0x198   : > { %v1167_v37 = vunpack.i.h.bf16 %v1165_v35  ;;  %v1166_v38 = vunpack.i.l.bf16 %v1165_v35  ;;  %1077 = vmatprep.subr.msk.bf16.mxu1 %vm1348_vm13, %v1075_v30 }
 0x199   : > { %v561_v39 = vsel %vm559_vm15, %v1161_v34, %v1162_v33  ;;  %1080 = vmatpush1.bf16.msk.msra.mxu1 %vm1348_vm13, %v1078_v36 }
 0x19a   : > { %v563_v41 = vsel %vm559_vm15, %v1166_v38, %v1167_v37  ;;  %v1170_v42 = vpop.permute.xlu0 %1169 }
 0x19b   : > { %v1069_v43 = vpack.c.bf16 %v563_v41, %v561_v39  ;;  %v1172_v44 = vunpack.i.h.bf16 %v1170_v42  ;;  %v1171_v45 = vunpack.i.l.bf16 %v1170_v42  ;;  %v1175_v46 = vpop.permute.xlu1 %1174 }
 0x19c   : > { %1056 = vmatmul.mubr.msk.f32.vlgmr.msra.gmra.mrb[0].mxu1 %vm444_vm14, %v1053_v40  ;;  %v1177_v49 = vunpack.i.h.bf16 %v1175_v46  ;;  %v1176_v50 = vunpack.i.l.bf16 %v1175_v46 }
 0x19d   : > { %v562_v47 = vsel %vm559_vm15, %v1172_v44, %v1166_v38  ;;  %v560_v48 = vsel %vm559_vm15, %v1171_v45, %v1161_v34  ;;  %1071 = vmatprep.subr.msk.bf16.mxu0 %vm1348_vm13, %v1069_v43  ;;  %880 = vmatprep.mubr.f32.mxu1 %v1233_v19 }
 0x19e   : > { %v1072_v51 = vpack.c.bf16 %v562_v47, %v560_v48  ;;  %v1180_v52 = vpop.permute.xlu0 %1179  ;;  %v804_v59 = vsel %vm802_vm0, %v1176_v50, %v1177_v49 }
 0x19f   : > { %v1182_v53 = vunpack.i.h.bf16 %v1180_v52  ;;  %v1181_v54 = vunpack.i.l.bf16 %v1180_v52  ;;  %v1185_v55 = vpop.permute.xlu1 %1184 }
 0x1a0   : > { %v1187_v56 = vunpack.i.h.bf16 %v1185_v55  ;;  %v1186_v57 = vunpack.i.l.bf16 %v1185_v55  ;;  %1074 = vmatpush1.bf16.msk.msra.mxu0 %vm1348_vm13, %v1072_v51 }
 0x1a1   : > { %v806_v60 = vsel %vm802_vm0, %v1181_v54, %v1182_v53 }
 0x1a2   : > { %v1081_v19 = vpack.c.bf16 %v806_v60, %v804_v59  ;;  %v803_v61 = vsel %vm802_vm0, %v1186_v57, %v1176_v50  ;;  %v805_v62 = vsel %vm802_vm0, %v1187_v56, %v1181_v54 }
 0x1a3   : > { %v1084_v63 = vpack.c.bf16 %v805_v62, %v803_v61  ;;  %1052 = vmatmul.mubr.msk.f32.vlgmr.msra.gmra.mrb[0].mxu0 %vm444_vm14, %v1049_v58 }
 0x1a4   : > { %1083 = vmatprep.subr.msk.bf16.mxu1 %vm1348_vm13, %v1081_v19 }
 0x1a5   : > { %1086 = vmatpush1.bf16.msk.msra.mxu1 %vm1348_vm13, %v1084_v63 }
 0x1a8   : > { %1060 = vmatmul.mubr.msk.f32.vlgmr.msra.gmra.mrb[0].mxu1 %vm444_vm14, %v1057_v0 }
 0x1af   : > { %v529_v2 = vpop.permute.xlu0 %528 }
 0x276   : > { %v639_v1 = vpop.f32.mrb[0].mxu0 }
 0x277   : > { %v1087_v3 = vadd.f32 %v639_v1, %v529_v2  ;;  %v641_v4 = vpop.f32.mrb[1].mxu0 }
 0x278   : > { %v1088_v5 = vadd.f32 %v641_v4, %v529_v2 }
 0x279   : > { %649 = vrot.lane.b32.xlu0 %v1087_v3, %s1231_s12  ;;  %654 = vrot.lane.b32.xlu1 %v1087_v3, %s1236_s6  ;;  %647 = vst.msk [vmem:[%s1410_s30] sm:$0xf] %vm646_vm1, %v1087_v3 }
 0x27a   : > { %662 = vst.msk [vmem:[%s1410_s30 + $0x8] sm:$0xf] %vm646_vm1, %v1088_v5 }
 0x27b   : > { %v882_v6 = vpop.f32.mrb[0].mxu1 }
 0x27c   : > { %v884_v7 = vpop.f32.mrb[1].mxu1  ;;  %v1089_v8 = vadd.f32 %v882_v6, %v529_v2 }
 0x27d   : > { %658 = vrot.lane.b32.xlu1 %v1087_v3, %s1234_s28  ;;  %664 = vrot.lane.b32.xlu0 %v1088_v5, %s1231_s12  ;;  %v1090_v9 = vadd.f32 %v884_v7, %v529_v2 }
 0x281   : > { %668 = vrot.lane.b32.xlu1 %v1088_v5, %s1236_s6  ;;  %890 = vrot.lane.b32.xlu0 %v1089_v8, %s1231_s12 }
 0x285   : > { %672 = vrot.lane.b32.xlu1 %v1088_v5, %s1234_s28  ;;  %906 = vrot.lane.b32.xlu0 %v1090_v9, %s1231_s12 }
 0x289   : > { %900 = vrot.lane.b32.xlu1 %v1089_v8, %s1234_s28  ;;  %895 = vrot.lane.b32.xlu0 %v1089_v8, %s1236_s6 }
 0x28d   : > { %914 = vrot.lane.b32.xlu1 %v1090_v9, %s1234_s28 }
 0x291   : > { %910 = vrot.lane.b32.xlu1 %v1090_v9, %s1236_s6 }
 0x2eb   : > { %v650_v10 = vpop.permute.xlu0 %649  ;;  %v655_v11 = vpop.permute.xlu1 %654 }
 0x2ec   : > { %653 = vst.msk [vmem:[%s1410_s30] sm:$0xf] %vm652_vm2, %v650_v10 }
 0x2ed   : > { %657 = vst.msk [vmem:[%s1410_s30 + $0x4] sm:$0xf] %vm646_vm1, %v655_v11 }
 0x2ef   : > { %v659_v12 = vpop.permute.xlu1 %658  ;;  %v665_v13 = vpop.permute.xlu0 %664 }
 0x2f0   : > { %661 = vst.msk [vmem:[%s1410_s30 + $0x4] sm:$0xf] %vm652_vm2, %v659_v12  ;;  %667 = vst.msk [vmem:[%s1410_s30 + $0x8] sm:$0xf] %vm652_vm2, %v665_v13 }
 0x2f3   : > { %v669_v14 = vpop.permute.xlu1 %668  ;;  %v891_v15 = vpop.permute.xlu0 %890 }
 0x2f4   : > { %671 = vst.msk [vmem:[%s1410_s30 + $0xc] sm:$0xf] %vm646_vm1, %v669_v14 }
 0x2f5   : > { %894 = vst.msk [vmem:[%s1410_s30] sm:$0xf] %vm893_vm3, %v891_v15 }
 0x2f7   : > { %v673_v16 = vpop.permute.xlu1 %672  ;;  %v907_v17 = vpop.permute.xlu0 %906 }
 0x2f8   : > { %675 = vst.msk [vmem:[%s1410_s30 + $0xc] sm:$0xf] %vm652_vm2, %v673_v16 }
 0x2f9   : > { %909 = vst.msk [vmem:[%s1410_s30 + $0x8] sm:$0xf] %vm893_vm3, %v907_v17 }
 0x2fb   : > { %v901_v18 = vpop.permute.xlu1 %900  ;;  %v896_v20 = vpop.permute.xlu0 %895 }
 0x2fc   : > { %903 = vst.msk [vmem:[%s1410_s30 + $0x4] sm:$0xf] %vm893_vm3, %v901_v18 }
 0x2fd   : > { %899 = vst.msk [vmem:[%s1410_s30] sm:$0xf] %vm898_vm4, %v896_v20  ;;  %904 = vst.msk [vmem:[%s1410_s30 + $0x4] sm:$0xf] %vm898_vm4, %v1089_v8 }
 0x2ff   : > { %v915_v21 = vpop.permute.xlu1 %914 }
 0x300   : > { %917 = vst.msk [vmem:[%s1410_s30 + $0xc] sm:$0xf] %vm893_vm3, %v915_v21 }
 0x301   : > { %918 = vst.msk [vmem:[%s1410_s30 + $0xc] sm:$0xf] %vm898_vm4, %v1090_v9 }
 0x303   : > { %v911_v22 = vpop.permute.xlu1 %910 }
 0x304   : > { %913 = vst.msk [vmem:[%s1410_s30 + $0x8] sm:$0xf] %vm898_vm4, %v911_v22 }
 0x305 PF: > { %s15_s22 = sadd.s32 1, %s1228_s22   ;;  %s1475_s18 = smov %s1220_s20 }
 0x306   : > { %p12_p9 = scmp.ge.s32.totalorder %s15_s22, 6   ;;  %s1476_s19 = smov %s1224_s21 }
 0x307   : > { %s1477_s20 = smov %s1480_s23  ;;  %s1478_s21 = smov %s1484_s24 }
 0x308   :  { %14 = sbr.rel (!%p12_p9) target bundleno = 3 (0x3), region = 78 }

</bundles_post_ra>
